<compile_context>
chip_gen: v7x
topology: tpu7x:2x2x1
jax: 0.10.0
libtpu: 0.0.40
codegen_flags: <defaults>
</compile_context>

<pallas_src>
import math

import jax
import jax.numpy as jnp
import numpy as np
from jax.experimental import pallas as pl
from jax.experimental.pallas import tpu as pltpu

# ----------------------------- config ---------------------------------------
D_MODEL   = 32
NUM_HEADS = 4
HEAD_DIM  = D_MODEL // NUM_HEADS
B         = 2
N_Q       = 16   # query sequence length (x)
N_KV      = 8    # context sequence length (cond)


# ----------------------------- Pallas kernel --------------------------------
def mhca_kernel(x_ref, c_ref, w_ref, b_ref, o_ref, og_scr):
    # x_ref : (1, N, C) bf16           c_ref : (1, M, C) bf16
    # w_ref : (4, C, C) bf16           rows: [Wq^T * scale, Wk^T, Wv^T, Wo^T]
    # b_ref : (4, 1, C) f32            rows: [bq * scale,   bk,   bv,   bo ]
    # o_ref : (1, N, C) f32            og_scr: (N, C) f32 VMEM scratch
    x0 = x_ref[0]                                     # (N, C) bf16
    c0 = c_ref[0]                                     # (M, C) bf16

    # Full-width projections: three 32-deep MXU matmuls, f32 accumulation,
    # f32 bias add, then cast once to bf16 for the attention matmuls.
    q = (jnp.dot(x0, w_ref[0], preferred_element_type=jnp.float32)
         + b_ref[0]).astype(jnp.bfloat16)             # (N, C), scale pre-folded
    k = (jnp.dot(c0, w_ref[1], preferred_element_type=jnp.float32)
         + b_ref[1]).astype(jnp.bfloat16)             # (M, C)
    v = (jnp.dot(c0, w_ref[2], preferred_element_type=jnp.float32)
         + b_ref[2]).astype(jnp.bfloat16)             # (M, C)

    # Per-head scaled-dot-product attention (scale already folded into Wq/bq).
    # Each head's output is written at its lane offset into og_scr, so og_scr
    # ends up holding the head-concatenated (N, H*Dh) = (N, C) activations.
    for h in range(NUM_HEADS):
        sl = slice(h * HEAD_DIM, (h + 1) * HEAD_DIM)
        s = jnp.einsum('nd,md->nm', q[:, sl], k[:, sl],
                       preferred_element_type=jnp.float32)        # (N, M) f32
        s = s - jnp.max(s, axis=-1, keepdims=True)
        p = jnp.exp(s)
        p = p * (1.0 / jnp.sum(p, axis=-1, keepdims=True))        # exact softmax
        og_scr[:, sl] = jnp.dot(p.astype(jnp.bfloat16), v[:, sl],
                                preferred_element_type=jnp.float32)

    # Fused head-concat + output projection: one (N, C) @ (C, C) matmul.
    out = jnp.dot(og_scr[...].astype(jnp.bfloat16), w_ref[3],
                  preferred_element_type=jnp.float32) + b_ref[3]  # (N, C) f32
    o_ref[0] = out


# ----------------------------- wrapper ---------------------------------------
def multi_head_cross_attention(x, cond, params):
    """x: (B, N, C), cond: (B, M, C). params are PyTorch-convention weights."""
    wq, bq, wkv, bkv, wo, bo = params          # W is (out_features, in_features)
    Bx, N, C = x.shape
    _, M, _ = cond.shape
    scale = 1.0 / math.sqrt(HEAD_DIM)

    # split fused kv weights (tiny, done once wrapper-side)
    wk, wv = wkv[:C], wkv[C:]
    bk, bv = bkv[:C], bkv[C:]

    # Pack all projection matrices (as (C_in, C_out)) into one bf16 operand and
    # all biases into one f32 operand; fold the attention scale into Wq / bq.
    w_all = jnp.stack([wq.T * scale, wk.T, wv.T, wo.T]).astype(jnp.bfloat16)  # (4, C, C)
    b_all = jnp.stack([bq * scale, bk, bv, bo])[:, None, :].astype(jnp.float32)  # (4, 1, C)

    x_b = x.astype(jnp.bfloat16)
    c_b = cond.astype(jnp.bfloat16)

    return pl.pallas_call(
        mhca_kernel,
        out_shape=jax.ShapeDtypeStruct((Bx, N, C), jnp.float32),
        grid_spec=pltpu.PrefetchScalarGridSpec(
            num_scalar_prefetch=0,
            grid=(Bx,),                                # one step per batch element
            in_specs=[
                pl.BlockSpec((1, N, C), lambda b: (b, 0, 0)),   # x
                pl.BlockSpec((1, M, C), lambda b: (b, 0, 0)),   # cond
                pl.BlockSpec((4, C, C), lambda b: (0, 0, 0)),   # stacked weights (fetched once)
                pl.BlockSpec((4, 1, C), lambda b: (0, 0, 0)),   # stacked biases  (fetched once)
            ],
            out_specs=pl.BlockSpec((1, N, C), lambda b: (b, 0, 0)),
            scratch_shapes=[pltpu.VMEM((N, C), jnp.float32)],   # head-concat buffer
        ),
        compiler_params=pltpu.CompilerParams(
            dimension_semantics=("parallel",)),        # batch split across TCs on v7x
    )(x_b, c_b, w_all, b_all)


# ----------------------------- pure-JAX reference ----------------------------
def reference(x, cond, params):
    wq, bq, wkv, bkv, wo, bo = params
    Bx, N, C = x.shape
    q = x @ wq.T + bq                                   # (B, N, C)
    kv = cond @ wkv.T + bkv                             # (B, M, 2C)
    k, v = kv[..., :C], kv[..., C:]
    q = q.reshape(Bx, N, NUM_HEADS, HEAD_DIM).transpose(0, 2, 1, 3)
    k = k.reshape(Bx, -1, NUM_HEADS, HEAD_DIM).transpose(0, 2, 1, 3)
    v = v.reshape(Bx, -1, NUM_HEADS, HEAD_DIM).transpose(0, 2, 1, 3)
    s = jnp.einsum("bhnd,bhmd->bhnm", q, k) / math.sqrt(HEAD_DIM)
    p = jax.nn.softmax(s, axis=-1)
    o = jnp.einsum("bhnm,bhmd->bhnd", p, v)
    o = o.transpose(0, 2, 1, 3).reshape(Bx, N, C)
    return o @ wo.T + bo


# ----------------------------- main ------------------------------------------
if __name__ == "__main__":
    key = jax.random.PRNGKey(0)
    keys = jax.random.split(key, 8)

    # deterministic synthetic parameters, PyTorch nn.Linear shapes: W (out, in)
    def linear_init(kw, kb, out_f, in_f):
        bound = 1.0 / math.sqrt(in_f)
        w = jax.random.uniform(kw, (out_f, in_f), jnp.float32, -bound, bound)
        b = jax.random.uniform(kb, (out_f,), jnp.float32, -bound, bound)
        return w, b

    wq, bq   = linear_init(keys[0], keys[1], D_MODEL, D_MODEL)
    wkv, bkv = linear_init(keys[2], keys[3], 2 * D_MODEL, D_MODEL)
    wo, bo   = linear_init(keys[4], keys[5], D_MODEL, D_MODEL)
    params = (wq, bq, wkv, bkv, wo, bo)

    x    = jax.random.normal(keys[6], (B, N_Q, D_MODEL), jnp.float32)
    cond = jax.random.normal(keys[7], (B, N_KV, D_MODEL), jnp.float32)

    out = multi_head_cross_attention(x, cond, params)
    out = jax.block_until_ready(out)

    ref = reference(x, cond, params)
    # Softmax normalization is exact; residual error comes only from bf16 MXU
    # inputs (f32 accumulation), which stays well inside 2e-2 at these shapes.
    np.testing.assert_allclose(np.asarray(out), np.asarray(ref),
                               rtol=2e-2, atol=2e-2)

    print("KERNEL_OK")
</pallas_src>

<mosaic_0001>
module attributes {stable_mosaic.version = 11 : i64} {
  func.func @mhca_kernel(%arg0: i32, %arg1: memref<1x16x32xbf16, #tpu.memory_space<vmem>>, %arg2: memref<1x8x32xbf16, #tpu.memory_space<vmem>>, %arg3: memref<4x32x32xbf16, #tpu.memory_space<vmem>>, %arg4: memref<4x1x32xf32, #tpu.memory_space<vmem>>, %arg5: memref<1x16x32xf32, #tpu.memory_space<vmem>>, %arg6: memref<16x32xf32, #tpu.memory_space<vmem>>) attributes {dimension_semantics = [#tpu.dimension_semantics<parallel>], iteration_bounds = array<i64: 2>, scalar_prefetch = 0 : i64, scratch_operands = 1 : i64, tpu.core_type = #tpu.core_type<tc>, window_params = [{transform_indices = @transform_0, window_bounds = array<i64: 1, 16, 32>}, {transform_indices = @transform_1, window_bounds = array<i64: 1, 8, 32>}, {pipeline_mode = #tpu.pipeline_mode<synchronous>, transform_indices = @transform_2, window_bounds = array<i64: 4, 32, 32>}, {pipeline_mode = #tpu.pipeline_mode<synchronous>, transform_indices = @transform_3, window_bounds = array<i64: 4, 1, 32>}, {transform_indices = @transform_4, window_bounds = array<i64: 1, 16, 32>}]} {
    %c0 = arith.constant 0 : index
    %c0_0 = arith.constant 0 : index
    %c0_1 = arith.constant 0 : index
    %0 = vector.load %arg1[%c0, %c0_0, %c0_1] : memref<1x16x32xbf16, #tpu.memory_space<vmem>>, vector<1x16x32xbf16>
    %1 = vector.shape_cast %0 : vector<1x16x32xbf16> to vector<16x32xbf16>
    %c0_2 = arith.constant 0 : index
    %c0_3 = arith.constant 0 : index
    %c0_4 = arith.constant 0 : index
    %2 = vector.load %arg2[%c0_2, %c0_3, %c0_4] : memref<1x8x32xbf16, #tpu.memory_space<vmem>>, vector<1x8x32xbf16>
    %3 = vector.shape_cast %2 : vector<1x8x32xbf16> to vector<8x32xbf16>
    %c0_5 = arith.constant 0 : index
    %c0_6 = arith.constant 0 : index
    %c0_7 = arith.constant 0 : index
    %4 = vector.load %arg3[%c0_5, %c0_6, %c0_7] : memref<4x32x32xbf16, #tpu.memory_space<vmem>>, vector<1x32x32xbf16>
    %5 = vector.shape_cast %4 : vector<1x32x32xbf16> to vector<32x32xbf16>
    %cst = arith.constant dense<0.000000e+00> : vector<16x32xf32>
    %6 = tpu.matmul %1, %5, %cst {dimension_numbers = #tpu.dot_dimension_numbers<[1], [0], [0], [1], [0, 0, 1, 1], [], []>} : vector<16x32xbf16>, vector<32x32xbf16>, vector<16x32xf32> -> vector<16x32xf32>
    %c0_8 = arith.constant 0 : index
    %c0_9 = arith.constant 0 : index
    %c0_10 = arith.constant 0 : index
    %7 = vector.load %arg4[%c0_8, %c0_9, %c0_10] : memref<4x1x32xf32, #tpu.memory_space<vmem>>, vector<1x1x32xf32>
    %8 = vector.shape_cast %7 : vector<1x1x32xf32> to vector<1x32xf32>
    %9 = vector.broadcast %8 : vector<1x32xf32> to vector<16x32xf32>
    %10 = arith.addf %6, %9 : vector<16x32xf32>
    %11 = arith.truncf %10 : vector<16x32xf32> to vector<16x32xbf16>
    %c1 = arith.constant 1 : index
    %c0_11 = arith.constant 0 : index
    %c0_12 = arith.constant 0 : index
    %12 = vector.load %arg3[%c1, %c0_11, %c0_12] : memref<4x32x32xbf16, #tpu.memory_space<vmem>>, vector<1x32x32xbf16>
    %13 = vector.shape_cast %12 : vector<1x32x32xbf16> to vector<32x32xbf16>
    %cst_13 = arith.constant dense<0.000000e+00> : vector<8x32xf32>
    %14 = tpu.matmul %3, %13, %cst_13 {dimension_numbers = #tpu.dot_dimension_numbers<[1], [0], [0], [1], [0, 0, 1, 1], [], []>} : vector<8x32xbf16>, vector<32x32xbf16>, vector<8x32xf32> -> vector<8x32xf32>
    %c1_14 = arith.constant 1 : index
    %c0_15 = arith.constant 0 : index
    %c0_16 = arith.constant 0 : index
    %15 = vector.load %arg4[%c1_14, %c0_15, %c0_16] : memref<4x1x32xf32, #tpu.memory_space<vmem>>, vector<1x1x32xf32>
    %16 = vector.shape_cast %15 : vector<1x1x32xf32> to vector<1x32xf32>
    %17 = vector.broadcast %16 : vector<1x32xf32> to vector<8x32xf32>
    %18 = arith.addf %14, %17 : vector<8x32xf32>
    %19 = arith.truncf %18 : vector<8x32xf32> to vector<8x32xbf16>
    %c2 = arith.constant 2 : index
    %c0_17 = arith.constant 0 : index
    %c0_18 = arith.constant 0 : index
    %20 = vector.load %arg3[%c2, %c0_17, %c0_18] : memref<4x32x32xbf16, #tpu.memory_space<vmem>>, vector<1x32x32xbf16>
    %21 = vector.shape_cast %20 : vector<1x32x32xbf16> to vector<32x32xbf16>
    %cst_19 = arith.constant dense<0.000000e+00> : vector<8x32xf32>
    %22 = tpu.matmul %3, %21, %cst_19 {dimension_numbers = #tpu.dot_dimension_numbers<[1], [0], [0], [1], [0, 0, 1, 1], [], []>} : vector<8x32xbf16>, vector<32x32xbf16>, vector<8x32xf32> -> vector<8x32xf32>
    %c2_20 = arith.constant 2 : index
    %c0_21 = arith.constant 0 : index
    %c0_22 = arith.constant 0 : index
    %23 = vector.load %arg4[%c2_20, %c0_21, %c0_22] : memref<4x1x32xf32, #tpu.memory_space<vmem>>, vector<1x1x32xf32>
    %24 = vector.shape_cast %23 : vector<1x1x32xf32> to vector<1x32xf32>
    %25 = vector.broadcast %24 : vector<1x32xf32> to vector<8x32xf32>
    %26 = arith.addf %22, %25 : vector<8x32xf32>
    %27 = arith.truncf %26 : vector<8x32xf32> to vector<8x32xbf16>
    %28 = vector.extract_strided_slice %11 {offsets = [0, 0], sizes = [16, 8], strides = [1, 1]} : vector<16x32xbf16> to vector<16x8xbf16>
    %29 = vector.extract_strided_slice %19 {offsets = [0, 0], sizes = [8, 8], strides = [1, 1]} : vector<8x32xbf16> to vector<8x8xbf16>
    "tpu.trace_start"() <{level = 10 : i32, message = "nd,md->nm"}> : () -> ()
    %cst_23 = arith.constant dense<0.000000e+00> : vector<16x8xf32>
    %30 = tpu.matmul %28, %29, %cst_23 {dimension_numbers = #tpu.dot_dimension_numbers<[1], [1], [0], [0], [0, 0, 1, 0], [], []>} : vector<16x8xbf16>, vector<8x8xbf16>, vector<16x8xf32> -> vector<16x8xf32>
    "tpu.trace_stop"() : () -> ()
    %cst_24 = arith.constant dense<0xFF800000> : vector<16xf32>
    %31 = vector.multi_reduction <maximumf>, %30, %cst_24 [1] : vector<16x8xf32> to vector<16xf32>
    %32 = vector.shape_cast %31 : vector<16xf32> to vector<16x1xf32>
    %33 = vector.broadcast %32 : vector<16x1xf32> to vector<16x8xf32>
    %34 = arith.subf %30, %33 : vector<16x8xf32>
    %35 = math.exp %34 : vector<16x8xf32>
    %cst_25 = arith.constant dense<0.000000e+00> : vector<16xf32>
    %36 = vector.multi_reduction <add>, %35, %cst_25 [1] : vector<16x8xf32> to vector<16xf32>
    %37 = vector.shape_cast %36 : vector<16xf32> to vector<16x1xf32>
    %cst_26 = arith.constant 1.000000e+00 : f32
    %38 = vector.broadcast %cst_26 : f32 to vector<16x1xf32>
    %39 = arith.divf %38, %37 : vector<16x1xf32>
    %40 = vector.broadcast %39 : vector<16x1xf32> to vector<16x8xf32>
    %41 = arith.mulf %35, %40 : vector<16x8xf32>
    %42 = arith.truncf %41 : vector<16x8xf32> to vector<16x8xbf16>
    %43 = vector.extract_strided_slice %27 {offsets = [0, 0], sizes = [8, 8], strides = [1, 1]} : vector<8x32xbf16> to vector<8x8xbf16>
    %cst_27 = arith.constant dense<0.000000e+00> : vector<16x8xf32>
    %44 = tpu.matmul %42, %43, %cst_27 {dimension_numbers = #tpu.dot_dimension_numbers<[1], [0], [0], [1], [0, 0, 1, 1], [], []>} : vector<16x8xbf16>, vector<8x8xbf16>, vector<16x8xf32> -> vector<16x8xf32>
    %c0_28 = arith.constant 0 : index
    %c0_29 = arith.constant 0 : index
    %45 = vector.load %arg6[%c0_28, %c0_29] : memref<16x32xf32, #tpu.memory_space<vmem>>, vector<16x8xf32>
    tpu.vector_store %arg6[%c0_28, %c0_29], %44 {strides = array<i32>} : memref<16x32xf32, #tpu.memory_space<vmem>>, vector<16x8xf32>,
    %46 = vector.extract_strided_slice %11 {offsets = [0, 8], sizes = [16, 8], strides = [1, 1]} : vector<16x32xbf16> to vector<16x8xbf16>
    %47 = vector.extract_strided_slice %19 {offsets = [0, 8], sizes = [8, 8], strides = [1, 1]} : vector<8x32xbf16> to vector<8x8xbf16>
    "tpu.trace_start"() <{level = 10 : i32, message = "nd,md->nm"}> : () -> ()
    %cst_30 = arith.constant dense<0.000000e+00> : vector<16x8xf32>
    %48 = tpu.matmul %46, %47, %cst_30 {dimension_numbers = #tpu.dot_dimension_numbers<[1], [1], [0], [0], [0, 0, 1, 0], [], []>} : vector<16x8xbf16>, vector<8x8xbf16>, vector<16x8xf32> -> vector<16x8xf32>
    "tpu.trace_stop"() : () -> ()
    %cst_31 = arith.constant dense<0xFF800000> : vector<16xf32>
    %49 = vector.multi_reduction <maximumf>, %48, %cst_31 [1] : vector<16x8xf32> to vector<16xf32>
    %50 = vector.shape_cast %49 : vector<16xf32> to vector<16x1xf32>
    %51 = vector.broadcast %50 : vector<16x1xf32> to vector<16x8xf32>
    %52 = arith.subf %48, %51 : vector<16x8xf32>
    %53 = math.exp %52 : vector<16x8xf32>
    %cst_32 = arith.constant dense<0.000000e+00> : vector<16xf32>
    %54 = vector.multi_reduction <add>, %53, %cst_32 [1] : vector<16x8xf32> to vector<16xf32>
    %55 = vector.shape_cast %54 : vector<16xf32> to vector<16x1xf32>
    %cst_33 = arith.constant 1.000000e+00 : f32
    %56 = vector.broadcast %cst_33 : f32 to vector<16x1xf32>
    %57 = arith.divf %56, %55 : vector<16x1xf32>
    %58 = vector.broadcast %57 : vector<16x1xf32> to vector<16x8xf32>
    %59 = arith.mulf %53, %58 : vector<16x8xf32>
    %60 = arith.truncf %59 : vector<16x8xf32> to vector<16x8xbf16>
    %61 = vector.extract_strided_slice %27 {offsets = [0, 8], sizes = [8, 8], strides = [1, 1]} : vector<8x32xbf16> to vector<8x8xbf16>
    %cst_34 = arith.constant dense<0.000000e+00> : vector<16x8xf32>
    %62 = tpu.matmul %60, %61, %cst_34 {dimension_numbers = #tpu.dot_dimension_numbers<[1], [0], [0], [1], [0, 0, 1, 1], [], []>} : vector<16x8xbf16>, vector<8x8xbf16>, vector<16x8xf32> -> vector<16x8xf32>
    %c0_35 = arith.constant 0 : index
    %c8 = arith.constant 8 : index
    %63 = vector.load %arg6[%c0_35, %c8] : memref<16x32xf32, #tpu.memory_space<vmem>>, vector<16x8xf32>
    tpu.vector_store %arg6[%c0_35, %c8], %62 {strides = array<i32>} : memref<16x32xf32, #tpu.memory_space<vmem>>, vector<16x8xf32>,
    %64 = vector.extract_strided_slice %11 {offsets = [0, 16], sizes = [16, 8], strides = [1, 1]} : vector<16x32xbf16> to vector<16x8xbf16>
    %65 = vector.extract_strided_slice %19 {offsets = [0, 16], sizes = [8, 8], strides = [1, 1]} : vector<8x32xbf16> to vector<8x8xbf16>
    "tpu.trace_start"() <{level = 10 : i32, message = "nd,md->nm"}> : () -> ()
    %cst_36 = arith.constant dense<0.000000e+00> : vector<16x8xf32>
    %66 = tpu.matmul %64, %65, %cst_36 {dimension_numbers = #tpu.dot_dimension_numbers<[1], [1], [0], [0], [0, 0, 1, 0], [], []>} : vector<16x8xbf16>, vector<8x8xbf16>, vector<16x8xf32> -> vector<16x8xf32>
    "tpu.trace_stop"() : () -> ()
    %cst_37 = arith.constant dense<0xFF800000> : vector<16xf32>
    %67 = vector.multi_reduction <maximumf>, %66, %cst_37 [1] : vector<16x8xf32> to vector<16xf32>
    %68 = vector.shape_cast %67 : vector<16xf32> to vector<16x1xf32>
    %69 = vector.broadcast %68 : vector<16x1xf32> to vector<16x8xf32>
    %70 = arith.subf %66, %69 : vector<16x8xf32>
    %71 = math.exp %70 : vector<16x8xf32>
    %cst_38 = arith.constant dense<0.000000e+00> : vector<16xf32>
    %72 = vector.multi_reduction <add>, %71, %cst_38 [1] : vector<16x8xf32> to vector<16xf32>
    %73 = vector.shape_cast %72 : vector<16xf32> to vector<16x1xf32>
    %cst_39 = arith.constant 1.000000e+00 : f32
    %74 = vector.broadcast %cst_39 : f32 to vector<16x1xf32>
    %75 = arith.divf %74, %73 : vector<16x1xf32>
    %76 = vector.broadcast %75 : vector<16x1xf32> to vector<16x8xf32>
    %77 = arith.mulf %71, %76 : vector<16x8xf32>
    %78 = arith.truncf %77 : vector<16x8xf32> to vector<16x8xbf16>
    %79 = vector.extract_strided_slice %27 {offsets = [0, 16], sizes = [8, 8], strides = [1, 1]} : vector<8x32xbf16> to vector<8x8xbf16>
    %cst_40 = arith.constant dense<0.000000e+00> : vector<16x8xf32>
    %80 = tpu.matmul %78, %79, %cst_40 {dimension_numbers = #tpu.dot_dimension_numbers<[1], [0], [0], [1], [0, 0, 1, 1], [], []>} : vector<16x8xbf16>, vector<8x8xbf16>, vector<16x8xf32> -> vector<16x8xf32>
    %c0_41 = arith.constant 0 : index
    %c16 = arith.constant 16 : index
    %81 = vector.load %arg6[%c0_41, %c16] : memref<16x32xf32, #tpu.memory_space<vmem>>, vector<16x8xf32>
    tpu.vector_store %arg6[%c0_41, %c16], %80 {strides = array<i32>} : memref<16x32xf32, #tpu.memory_space<vmem>>, vector<16x8xf32>,
    %82 = vector.extract_strided_slice %11 {offsets = [0, 24], sizes = [16, 8], strides = [1, 1]} : vector<16x32xbf16> to vector<16x8xbf16>
    %83 = vector.extract_strided_slice %19 {offsets = [0, 24], sizes = [8, 8], strides = [1, 1]} : vector<8x32xbf16> to vector<8x8xbf16>
    "tpu.trace_start"() <{level = 10 : i32, message = "nd,md->nm"}> : () -> ()
    %cst_42 = arith.constant dense<0.000000e+00> : vector<16x8xf32>
    %84 = tpu.matmul %82, %83, %cst_42 {dimension_numbers = #tpu.dot_dimension_numbers<[1], [1], [0], [0], [0, 0, 1, 0], [], []>} : vector<16x8xbf16>, vector<8x8xbf16>, vector<16x8xf32> -> vector<16x8xf32>
    "tpu.trace_stop"() : () -> ()
    %cst_43 = arith.constant dense<0xFF800000> : vector<16xf32>
    %85 = vector.multi_reduction <maximumf>, %84, %cst_43 [1] : vector<16x8xf32> to vector<16xf32>
    %86 = vector.shape_cast %85 : vector<16xf32> to vector<16x1xf32>
    %87 = vector.broadcast %86 : vector<16x1xf32> to vector<16x8xf32>
    %88 = arith.subf %84, %87 : vector<16x8xf32>
    %89 = math.exp %88 : vector<16x8xf32>
    %cst_44 = arith.constant dense<0.000000e+00> : vector<16xf32>
    %90 = vector.multi_reduction <add>, %89, %cst_44 [1] : vector<16x8xf32> to vector<16xf32>
    %91 = vector.shape_cast %90 : vector<16xf32> to vector<16x1xf32>
    %cst_45 = arith.constant 1.000000e+00 : f32
    %92 = vector.broadcast %cst_45 : f32 to vector<16x1xf32>
    %93 = arith.divf %92, %91 : vector<16x1xf32>
    %94 = vector.broadcast %93 : vector<16x1xf32> to vector<16x8xf32>
    %95 = arith.mulf %89, %94 : vector<16x8xf32>
    %96 = arith.truncf %95 : vector<16x8xf32> to vector<16x8xbf16>
    %97 = vector.extract_strided_slice %27 {offsets = [0, 24], sizes = [8, 8], strides = [1, 1]} : vector<8x32xbf16> to vector<8x8xbf16>
    %cst_46 = arith.constant dense<0.000000e+00> : vector<16x8xf32>
    %98 = tpu.matmul %96, %97, %cst_46 {dimension_numbers = #tpu.dot_dimension_numbers<[1], [0], [0], [1], [0, 0, 1, 1], [], []>} : vector<16x8xbf16>, vector<8x8xbf16>, vector<16x8xf32> -> vector<16x8xf32>
    %c0_47 = arith.constant 0 : index
    %c24 = arith.constant 24 : index
    %99 = vector.load %arg6[%c0_47, %c24] : memref<16x32xf32, #tpu.memory_space<vmem>>, vector<16x8xf32>
    tpu.vector_store %arg6[%c0_47, %c24], %98 {strides = array<i32>} : memref<16x32xf32, #tpu.memory_space<vmem>>, vector<16x8xf32>,
    %c0_48 = arith.constant 0 : index
    %c0_49 = arith.constant 0 : index
    %100 = vector.load %arg6[%c0_48, %c0_49] : memref<16x32xf32, #tpu.memory_space<vmem>>, vector<16x32xf32>
    %101 = arith.truncf %100 : vector<16x32xf32> to vector<16x32xbf16>
    %c3 = arith.constant 3 : index
    %c0_50 = arith.constant 0 : index
    %c0_51 = arith.constant 0 : index
    %102 = vector.load %arg3[%c3, %c0_50, %c0_51] : memref<4x32x32xbf16, #tpu.memory_space<vmem>>, vector<1x32x32xbf16>
    %103 = vector.shape_cast %102 : vector<1x32x32xbf16> to vector<32x32xbf16>
    %cst_52 = arith.constant dense<0.000000e+00> : vector<16x32xf32>
    %104 = tpu.matmul %101, %103, %cst_52 {dimension_numbers = #tpu.dot_dimension_numbers<[1], [0], [0], [1], [0, 0, 1, 1], [], []>} : vector<16x32xbf16>, vector<32x32xbf16>, vector<16x32xf32> -> vector<16x32xf32>
    %c3_53 = arith.constant 3 : index
    %c0_54 = arith.constant 0 : index
    %c0_55 = arith.constant 0 : index
    %105 = vector.load %arg4[%c3_53, %c0_54, %c0_55] : memref<4x1x32xf32, #tpu.memory_space<vmem>>, vector<1x1x32xf32>
    %106 = vector.shape_cast %105 : vector<1x1x32xf32> to vector<1x32xf32>
    %107 = vector.broadcast %106 : vector<1x32xf32> to vector<16x32xf32>
    %108 = arith.addf %104, %107 : vector<16x32xf32>
    %c0_56 = arith.constant 0 : index
    %c0_57 = arith.constant 0 : index
    %c0_58 = arith.constant 0 : index
    %109 = vector.load %arg5[%c0_56, %c0_57, %c0_58] : memref<1x16x32xf32, #tpu.memory_space<vmem>>, vector<1x16x32xf32>
    %110 = vector.shape_cast %109 : vector<1x16x32xf32> to vector<16x32xf32>
    %111 = vector.shape_cast %108 : vector<16x32xf32> to vector<1x16x32xf32>
    tpu.vector_store %arg5[%c0_56, %c0_57, %c0_58], %111 {strides = array<i32>} : memref<1x16x32xf32, #tpu.memory_space<vmem>>, vector<1x16x32xf32>,
    return
  }
  func.func @transform_0(%arg0: i32) -> (i32, i32, i32) {
    %c0_i32 = arith.constant 0 : i32
    %c0_i32_0 = arith.constant 0 : i32
    %c0_i32_1 = arith.constant 0 : i32
    return %arg0, %c0_i32, %c0_i32_0 : i32, i32, i32
  }
  func.func @transform_1(%arg0: i32) -> (i32, i32, i32) {
    %c0_i32 = arith.constant 0 : i32
    %c0_i32_0 = arith.constant 0 : i32
    %c0_i32_1 = arith.constant 0 : i32
    return %arg0, %c0_i32, %c0_i32_0 : i32, i32, i32
  }
  func.func @transform_2(%arg0: i32) -> (i32, i32, i32) {
    %c0_i32 = arith.constant 0 : i32
    %c0_i32_0 = arith.constant 0 : i32
    %c0_i32_1 = arith.constant 0 : i32
    %c0_i32_2 = arith.constant 0 : i32
    return %c0_i32, %c0_i32_0, %c0_i32_1 : i32, i32, i32
  }
  func.func @transform_3(%arg0: i32) -> (i32, i32, i32) {
    %c0_i32 = arith.constant 0 : i32
    %c0_i32_0 = arith.constant 0 : i32
    %c0_i32_1 = arith.constant 0 : i32
    %c0_i32_2 = arith.constant 0 : i32
    return %c0_i32, %c0_i32_0, %c0_i32_1 : i32, i32, i32
  }
  func.func @transform_4(%arg0: i32) -> (i32, i32, i32) {
    %c0_i32 = arith.constant 0 : i32
    %c0_i32_0 = arith.constant 0 : i32
    %c0_i32_1 = arith.constant 0 : i32
    return %arg0, %c0_i32, %c0_i32_0 : i32, i32, i32
  }
}

</mosaic_0001>

<bundles_post_ra>
// kernel: tpu_custom_call.1
= control target key start
LH: loop header
LB: loop body
LE: loop exit
PB: predicated region body
PF: predicated region fallthrough
CT: control target
= control target key end

     0   :  { %s2038_s0 = inlined_call_operand.hbm [shape: bf16[2,16,32], index: 0, kind: input, shape index: {}]   ;;  %s2039_s1 = inlined_call_operand.hbm [shape: bf16[2,8,32], index: 1, kind: input, shape index: {}]   ;;  %s2040_s2 = inlined_call_operand.hbm [shape: bf16[4,32,32], index: 2, kind: input, shape index: {}]   ;;  %s2041_s3 = inlined_call_operand.vmem [shape: f32[4,1,32], index: 3, kind: input, shape index: {}]   ;;  %s2042_s4 = inlined_call_operand.hbm [shape: f32[2,16,32], index: 4, kind: output, shape index: {}]  }
   0x1   :  { %2047 = sst [smem:[#allocation14_spill]] %s2038_s0 }
   0x2   :  { %2048 = sst [smem:[#allocation15_spill]] %s2040_s2 }
   0x3   :  { %9 = vsyncpa [#allocation4], 0 }
   0x4   :  { %11 = vsyncpa [#allocation4 + $0x1], 0 }
   0x5   :  { %12 = vsyncpa [#allocation7], 0 }
   0x6   :  { %14 = vsyncpa [#allocation7 + $0x1], 0 }
   0x7   :  { %15 = vsyncpa [#allocation5], 0 }
   0x8   :  { %17 = vsyncpa [#allocation5 + $0x1], 0  ;;  %s1682_s15 = smov 0   ;;  %s1684_s16 = smov 0  }
   0x9   :  { %s1686_s17 = smov 0   ;;  %s1688_s18 = smov 0  }
   0xa LB: > { %s1703_s19 = sadd.s32 4294967295, %s1640_s18   ;;  %s1207_s20 = sadd.s32 4294967294, %s1640_s18   ;;  %s1640_s18 = sphi %s1688_s18, %s2068_s18   ;;  %s1636_s17 = sphi %s1686_s17, %s2067_s17   ;;  %s1632_s16 = sphi %s1684_s16, %s2066_s16   ;;  %s1628_s15 = sphi %s1682_s15, %s2065_s15  }
   0xb   : > { %p43_p0 = scmp.ne.s32.totalorder %s1632_s16, %s1628_s15  ;;  %p2043_p1 = scmp.eq.s32.totalorder %s1703_s19, 0 }
   0xc   : > { %p141_p3 = scmp.eq.s32.totalorder %s1207_s20, 1  ;;  %p1208_p5 = scmp.ge.s32.totalorder %s1640_s18, 1 }
   0xd   : > { %p1712_p4 = por %p2043_p1, %p43_p0  ;;  %p148_p7 = scmp.lt.s32.totalorder %s1640_s18, 3 }
   0xe   : > { %p1717_p6 = por %p141_p3, %p43_p0  ;;  %s1642_s24 = smov [#allocation8]  }
   0xf   : > { %s2049_s21 = scalar_select %p1712_p4, 1, 0 }
  0x10   : > { %s2050_s22 = scalar_select %p1717_p6, 1, 0 }
  0x11   : > { %p1722_p8 = pnand %p1208_p5, %p148_p7  ;;  %s160_s25 = sshll.u32 %s1642_s24, 4  ;;  %s1726_s25 = int_to_ptr.vmem [resolvable:$true] %s160_s25 }
  0x12   : > { %s1738_s27 = sadd.s32 1, %s1640_s18   ;;  %s30_s28 = sadd.s32 1, %s1636_s17 }
  0x13   : > { %s2051_s23 = scalar_select %p1722_p8, 1, 0 }
  0x14   : > { %p1374_p9 = pneg %p1722_p8  ;;  %s27_s29 = ssub.s32 %s1640_s18, %s1738_s27 }
  0x15   : > { %s2053_s2 = sld [smem:[#allocation15_spill]] }
  0x16   : > { %p1733_p11 = pnand %p1374_p9, %p2043_p1 }
  0x18   : > { %p1480_p13 = pneg %p1733_p11 }
  0x1b   : > { %s1478_s6 = scalar_lea.hbm %s2053_s2, 1024 }
  0x1c   : > { %p1479_p12 = scmp.ne.s32.totalorder %s2053_s2, %s1478_s6  ;;  %p1485_p5 = scmp.lt.u32.totalorder %s1478_s6, %s2053_s2 }
  0x1e   : > { %p1481_p0 = pnand %p1480_p13, %p1479_p12 }
  0x20   : > { %p1482_p3 = pneg %p1481_p0 }
  0x22   : > { %p1487_p7 = pnand %p1485_p5, %p1482_p3 }
  0x24   : > { %1490 = shalt.err (!%p1487_p7)
}
  0x25   : > { %s1491_s11 = scalar_lea.vmem %s1726_s25, 1024  ;;  %p1499_p2 = scmp.lt.s32.totalorder %s1726_s25, %s1726_s25 }
  0x26   : > { %p1492_p9 = scmp.ne.s32.totalorder %s1726_s25, %s1491_s11  ;;  %p1500_p6 = scmp.lt.s32.totalorder %s1491_s11, %s1491_s11 }
  0x28   : > { %p1494_p10 = pnand %p1492_p9, %p1480_p13  ;;  %p1501_p4 = por %p1500_p6, %p1499_p2 }
  0x2a   : > { %p1495_p1 = pneg %p1494_p10 }
  0x2c   : > { %p1502_p8 = pnand %p1501_p4, %p1495_p1 }
  0x2e   : > { %1505 = shalt.err (!%p1502_p8)
}
  0x2f   : > { %s1643_s12 = smov 64   ;;  %s1644_s13 = smov 4  }
  0x30   : > { %1377 = dma.hbm_to_vmem [thread:$0]  (!%p1733_p11), %s2053_s2, 1024, %s1726_s25, [#allocation7], %s1643_s12, %s1643_s12, %s1644_s13  }
  0x31   : > { %p28_p1 = scmp.eq.s32.totalorder %s27_s29, 0  ;;  %p37_p2 = scmp.ne.s32.totalorder %s1636_s17, %s1632_s16 }
  0x32   : > { %p38_p4 = scmp.eq.s32.totalorder %s1640_s18, 0  ;;  %p1390_p6 = scmp.lt.s32.totalorder %s1640_s18, 2 }
  0x33   : > { %s1772_s24 = scalar_select %p28_p1, %s1636_s17, %s30_s28  }
  0x34   : > { %p39_p8 = por %p38_p4, %p37_p2  ;;  %p2054_p10 = scmp.eq.s32.totalorder %s1703_s19, 1 }
  0x35   : > { %s1781_s26 = sand.u32 1, %s1636_s17   ;;  %s1254_s5 = sshll.u32 %s1640_s18, 7 }
  0x36   : > { %p1776_p12 = por %p2054_p10, %p37_p2  ;;  %s1211_s6 = sshll.u32 %s1781_s26, 3 }
  0x37   : > { %s2056_s0 = sld [smem:[#allocation14_spill]]  ;;  %s181_s28 = scalar_lea.vmem [#allocation3], %s1211_s6 }
  0x38   : > { %s2055_s30 = scalar_select %p1776_p12, 1, 0 }
  0x39   : > { %s188_s8 = sshll.u32 %s181_s28, 4  ;;  %p1790_p11 = pnand %p1390_p6, %p39_p8  ;;  %s1794_s8 = int_to_ptr.vmem [resolvable:$true] %s188_s8 }
  0x3a   : > { %s198_s10 = sand.u32 1, %s1640_s18   ;;  %s178_s11 = scalar_lea.sflag [#allocation4], %s1781_s26 }
  0x3b   : > { %p1508_p0 = pneg %p1790_p11 }
  0x3d   : > { %s1788_s29 = scalar_lea.hbm %s2056_s0, %s1254_s5  ;;  %s1511_s6 = scalar_lea.hbm %s2056_s0, 256 }
  0x3e   : > { %s1506_s14 = scalar_lea.hbm %s1788_s29, 128  ;;  %p1512_p7 = scmp.lt.u32.totalorder %s1788_s29, %s2056_s0 }
  0x3f   : > { %p1507_p13 = scmp.ne.s32.totalorder %s1788_s29, %s1506_s14  ;;  %p1513_p9 = scmp.lt.u32.totalorder %s1511_s6, %s1506_s14 }
  0x40   : > { %p1515_p2 = scmp.lt.u32.totalorder %s1506_s14, %s1788_s29 }
  0x41   : > { %p1509_p3 = pnand %p1508_p0, %p1507_p13  ;;  %p1514_p1 = por %p1513_p9, %p1512_p7 }
  0x43   : > { %p1510_p5 = pneg %p1509_p3  ;;  %p1516_p4 = por %p1515_p2, %p1514_p1 }
  0x45   : > { %p1517_p6 = pnand %p1516_p4, %p1510_p5 }
  0x47   : > { %1520 = shalt.err (!%p1517_p6)
}
  0x48   : > { %s1521_s28 = scalar_lea.vmem %s1794_s8, 128  ;;  %s1645_s20 = smov [#allocation3]  }
  0x49   : > { %p1522_p8 = scmp.ne.s32.totalorder %s1794_s8, %s1521_s28  ;;  %s1526_s5 = sshll.u32 %s1645_s20, 4  ;;  %s1527_s5 = int_to_ptr.vmem [resolvable:$false] %s1526_s5 }
  0x4a   : > { %s1528_s25 = scalar_lea.vmem %s1527_s5, 256  ;;  %p1529_p3 = scmp.lt.s32.totalorder %s1794_s8, %s1527_s5 }
  0x4b   : > { %p1524_p10 = pnand %p1522_p8, %p1508_p0  ;;  %p1530_p7 = scmp.lt.s32.totalorder %s1528_s25, %s1521_s28 }
  0x4d   : > { %p1525_p13 = pneg %p1524_p10  ;;  %p1531_p9 = por %p1530_p7, %p1529_p3 }
  0x4f   : > { %p1532_p1 = pnand %p1531_p9, %p1525_p13 }
  0x51   : > { %1535 = shalt.err (!%p1532_p1)
}
  0x52   : > { %1381 = dma.hbm_to_vmem [thread:$0]  (!%p1790_p11), %s1788_s29, 128, %s1794_s8, %s178_s11, %s1643_s12, %s1643_s12, %s1644_s13  }
  0x53   : > { %s1214_s14 = sshll.u32 %s1781_s26, 2  ;;  %s1215_s6 = sshll.u32 %s1640_s18, 6 }
  0x54   : > { %s1833_s20 = scalar_lea.hbm %s2039_s1, %s1215_s6  ;;  %s202_s5 = scalar_lea.vmem [#allocation6], %s1214_s14 }
  0x55   : > { %s209_s25 = sshll.u32 %s202_s5, 4  ;;  %s199_s0 = scalar_lea.sflag [#allocation7], %s198_s10  ;;  %s210_s25 = int_to_ptr.vmem [resolvable:$true] %s209_s25 }
  0x56   : > { %s1536_s2 = scalar_lea.hbm %s1833_s20, 64  ;;  %s1541_s26 = scalar_lea.hbm %s2039_s1, 128 }
  0x57   : > { %p1537_p5 = scmp.ne.s32.totalorder %s1833_s20, %s1536_s2  ;;  %p1542_p6 = scmp.lt.u32.totalorder %s1833_s20, %s2039_s1 }
  0x58   : > { %p1543_p8 = scmp.lt.u32.totalorder %s1541_s26, %s1536_s2  ;;  %p1545_p13 = scmp.lt.u32.totalorder %s1536_s2, %s1833_s20 }
  0x59   : > { %p1539_p2 = pnand %p1537_p5, %p1508_p0 }
  0x5a   : > { %p1544_p10 = por %p1543_p8, %p1542_p6 }
  0x5b   : > { %p1540_p4 = pneg %p1539_p2 }
  0x5c   : > { %p1546_p3 = por %p1545_p13, %p1544_p10 }
  0x5e   : > { %p1547_p7 = pnand %p1546_p3, %p1540_p4 }
  0x60   : > { %1550 = shalt.err (!%p1547_p7)
}
  0x61   : > { %s1551_s10 = scalar_lea.vmem %s210_s25, 64  ;;  %s1646_s11 = smov [#allocation6]  }
  0x62   : > { %p1552_p9 = scmp.ne.s32.totalorder %s210_s25, %s1551_s10  ;;  %s1556_s14 = sshll.u32 %s1646_s11, 4  ;;  %s1557_s14 = int_to_ptr.vmem [resolvable:$false] %s1556_s14 }
  0x63   : > { %s1558_s6 = scalar_lea.vmem %s1557_s14, 128  ;;  %p1559_p2 = scmp.lt.s32.totalorder %s210_s25, %s1557_s14 }
  0x64   : > { %p1554_p1 = pnand %p1552_p9, %p1508_p0  ;;  %p1560_p12 = scmp.lt.s32.totalorder %s1558_s6, %s1551_s10 }
  0x66   : > { %p1555_p5 = pneg %p1554_p1  ;;  %p1561_p6 = por %p1560_p12, %p1559_p2 }
  0x68   : > { %p1562_p8 = pnand %p1561_p6, %p1555_p5 }
  0x6a   : > { %1565 = shalt.err (!%p1562_p8)
}
  0x6b   : > { %1384 = dma.hbm_to_vmem [thread:$0]  (!%p1790_p11), %s1833_s20, 64, %s210_s25, %s199_s0  }
  0x6c   : > { %p2058_p4 = scmp.ne.s32.totalorder %s2051_s23, 0 }
  0x6d   : > { %s1859_s2 = sand.u32 (!%p2058_p4), 1, %s1632_s16   ;;  %p2059_p0 = scmp.ne.s32.totalorder (!%p2058_p4), %s2049_s21, 0 }
  0x6e   : > { %218 = sbr.rel (%p2058_p4) target bundleno = 1591 (0x637), region = 36  ;;  %s1217_s7 = sshll.u32 (!%p2058_p4), %s1859_s2, 3 }
  0x6f   : > { %s221_s28 = scalar_lea.sflag (!%p2058_p4), [#allocation4], %s1859_s2  ;;  %s224_s5 = scalar_lea.vmem (!%p2058_p4), [#allocation3], %s1217_s7 }
  0x75   : > { %1611 = dma.done.wait (%p2059_p0), %s221_s28, 128  }
  0x76   : > { %1613 = vsyncadd (%p2059_p0), %s221_s28, 4294967168  ;;  %s229_s0 = sand.u32 1, %s1703_s19   ;;  %s1218_s23 = sshll.u32 %s1859_s2, 2 }
  0x77   : > { %s230_s9 = scalar_lea.sflag [#allocation7], %s229_s0  ;;  %s233_s20 = scalar_lea.vmem [#allocation6], %s1218_s23 }
  0x78   : > { %1615 = dma.done.wait (%p2059_p0), %s230_s9, 64  }
  0x79   : > { %1617 = vsyncadd (%p2059_p0), %s230_s9, 4294967232  ;;  %p2060_p12 = scmp.eq.s32.totalorder %s1703_s19, 0 }
  0x7b   : > { %1619 = dma.done.wait (%p2060_p12), [#allocation7], 1024   ;;  %p2061_p11 = pmov %p2060_p12 }
  0x7c   : > { %v1647_v0 = vmov 0.0   ;;  %vm1648_vm0 = vmmov 0   ;;  %v1437_v1 = vld [vmem:[#allocation8 + $0x10] sm:$0xff]   ;;  %v1438_v2 = vld [vmem:[#allocation8] sm:$0xff]   ;;  %v1439_v3 = vld [vmem:[#allocation8 + $0x18] sm:$0xff]   ;;  %vm299_vm1 = vcmask 261120  }
  0x7d   : > { %1621 = vsyncadd (%p2061_p11), [#allocation7], 4294966272  ;;  %1292 = vmatprep.subr.bf16.mxu1 %v1647_v0  ;;  %1284 = vmatprep.subr.bf16.mxu0 %v1647_v0  ;;  %v1440_v4 = vld [vmem:[#allocation8 + $0x8] sm:$0xff]   ;;  %v270_v5 = vld [vmem:[%s233_s20] sm:$0xf]  ;;  %vm480_vm2 = vcmask 64512  }
  0x7e   : > { %1296 = vmatprep.mubr.msk.bf16.mxu1 %vm1648_vm0, %v1647_v0  ;;  %1288 = vmatprep.mubr.msk.bf16.mxu0 %vm1648_vm0, %v1647_v0  ;;  %v1441_v6 = vld [vmem:[%s224_s5] sm:$0xff]   ;;  %v1227_v7 = vld [vmem:[%s2041_s3 + $0x1] ss:$0 sm:$0xff]  ;;  %v1221_v8 = vld [vmem:[%s2041_s3] ss:$0 sm:$0xff]  ;;  %s1649_s26 = smov 112  }
  0x7f   : > { %1293 = vmatpush3.bf16.msra.mxu1 %v1437_v1  ;;  %1285 = vmatpush3.bf16.msra.mxu0 %v1438_v2  ;;  %s1650_s29 = smov 120   ;;  %s1651_s8 = smov 104   ;;  %v1442_v23 = vld [vmem:[#allocation8 + $0x20] sm:$0xff]   ;;  %v1443_v24 = vld [vmem:[#allocation8 + $0x28] sm:$0xff]   ;;  %v1232_v40 = vld [vmem:[%s2041_s3 + $0x2] ss:$0 sm:$0xff] }
  0x80   : > { %1294 = vmatprep.subr.bf16.mxu1 %v1647_v0  ;;  %1286 = vmatprep.subr.bf16.mxu0 %v1647_v0  ;;  %vm556_vm3 = vcmask 1043456   ;;  %s1652_s14 = smov 8   ;;  %s1653_s6 = smov 16   ;;  %vm739_vm4 = vcmask 130112   ;;  %vm875_vm5 = vcmask 195712   ;;  %vm1011_vm6 = vcmask 261312  }
  0x81   : > { %s1654_s7 = smov 24   ;;  %s1220_s28 = sshll.u32 %s1859_s2, 4 }
  0x82   : > { %s266_s23 = scalar_lea.vmem [#allocation9], %s1220_s28  ;;  %s1255_s20 = sshll.u32 %s1703_s19, 8 }
  0x83   : > { %1295 = vmatpush3.bf16.msra.mxu1 %v1439_v3  ;;  %1287 = vmatpush3.bf16.msra.mxu0 %v1440_v4  ;;  %s1102_s9 = sshll.u32 %s266_s23, 4  ;;  %s1992_s12 = scalar_lea.hbm %s2042_s4, %s1255_s20  ;;  %s1986_s9 = int_to_ptr.vmem [resolvable:$true] %s1102_s9 }
  0x84   : > { %1308 = vmatprep.subr.bf16.mxu1 %v1647_v0  ;;  %1300 = vmatprep.subr.bf16.mxu0 %v1647_v0  ;;  %s1089_s19 = scalar_lea.sflag [#allocation5], %s1859_s2  ;;  %s1566_s13 = scalar_lea.vmem %s1986_s9, 256 }
  0x85   : > { %p1567_p10 = scmp.ne.s32.totalorder %s1986_s9, %s1566_s13  ;;  %p2062_p13 = scmp.ne.s32.totalorder %s2055_s30, 0 }
  0x86   : > { %1297 = vmatmul.mubr.msk.bf16.vlgmr.msra.gmra.mrb[0].mxu1 %vm299_vm1, %v270_v5  ;;  %1289 = vmatmul.mubr.msk.bf16.vlgmr.msra.gmra.mrb[0].mxu0 %vm299_vm1, %v1441_v6 }
  0x87   : > { %1310 = vmatprep.mubr.msk.bf16.mxu1 %vm1648_vm0, %v1647_v0  ;;  %1304 = vmatprep.mubr.msk.bf16.mxu0 %vm1648_vm0, %v1647_v0  ;;  %p1568_p3 = pnand %p1567_p10, %p2062_p13 }
  0x88   : > { %1301 = vmatpush3.bf16.msra.mxu0 %v1442_v23 }
  0x89   : > { %1302 = vmatprep.subr.bf16.mxu0 %v1647_v0  ;;  %p1569_p7 = pneg %p1568_p3 }
  0x8c   : > { %1303 = vmatpush3.bf16.msra.mxu0 %v1443_v24 }
  0x8d   : > { %1314 = vmatprep.subr.bf16.mxu0 %v1647_v0 }
  0x8f   : > { %1305 = vmatmul.mubr.msk.bf16.vlgmr.msra.gmra.mrb[4].mxu0 %vm299_vm1, %v270_v5 }
  0x90   : > { %1316 = vmatprep.mubr.msk.bf16.mxu0 %vm1648_vm0, %v1647_v0 }
 0x159   : > { %v407_v9 = vpop.f32.mrb[0].mxu1  ;;  %v337_v12 = vpop.f32.mrb[0].mxu0 }
 0x15a   : > { %v408_v10 = vadd.f32 %v1227_v7, %v407_v9  ;;  %v1298_v11 = vpop.f32.mrb[1].mxu1  ;;  %v338_v13 = vadd.f32 %v1221_v8, %v337_v12  ;;  %v1290_v15 = vpop.f32.mrb[1].mxu0 }
 0x15b   : > { %v410_v14 = vpop.f32.mrb[2].mxu1  ;;  %v340_v18 = vpop.f32.mrb[2].mxu0 }
 0x15c   : > { %v413_v16 = vpack.c.bf16 %v408_v10, %v408_v10  ;;  %v1299_v17 = vpop.f32.mrb[3].mxu1  ;;  %v341_v19 = vadd.f32 %v1221_v8, %v340_v18  ;;  %v1291_v20 = vpop.f32.mrb[3].mxu0 }
 0x15e   : > { %744 = vrot.lane.b32.xlu1 %v413_v16, %s1649_s26  ;;  %607 = vrot.lane.b32.xlu0 %v413_v16, %s1650_s29  ;;  %v485_v21 = vsel %vm480_vm2, %v413_v16, 0  ;;  %v344_v22 = vpack.c.bf16 %v341_v19, %v338_v13 }
 0x15f   : > { %1309 = vmatpush3.bf16.xpose.msra.mxu1 %v485_v21 }
 0x160   : > { %1320 = vmatprep.subr.bf16.mxu1 %v1647_v0 }
 0x162   : > { %742 = vrot.lane.b32.xlu1 %v344_v22, %s1649_s26  ;;  %604 = vrot.lane.b32.xlu0 %v344_v22, %s1650_s29  ;;  %v473_v41 = vpop.f32.mrb[4].mxu0 }
 0x163   : > { %v474_v42 = vadd.f32 %v1232_v40, %v473_v41  ;;  %v1306_v43 = vpop.f32.mrb[5].mxu0 }
 0x164   : > { %v476_v44 = vpop.f32.mrb[6].mxu0 }
 0x165   : > { %v1935_v45 = vpack.c.bf16 %v474_v42, %v474_v42  ;;  %v1307_v46 = vpop.f32.mrb[7].mxu0 }
 0x166   : > { %878 = vrot.lane.b32.xlu1 %v344_v22, %s1651_s8  ;;  %880 = vrot.lane.b32.xlu0 %v413_v16, %s1651_s8 }
 0x167   : > { %1311 = vmatmul.mubr.msk.bf16.vlgmr.msra.gmra.mrb[4].mxu1 %vm480_vm2, %v344_v22  ;;  %v558_v47 = vsel %vm556_vm3, %v1935_v45, 0 }
 0x168   : > { %1322 = vmatprep.mubr.msk.bf16.mxu1 %vm1648_vm0, %v1647_v0  ;;  %1315 = vmatpush3.bf16.msra.mxu0 %v558_v47 }
 0x169   : > { %1326 = vmatprep.subr.bf16.mxu0 %v1647_v0 }
 0x1d0   : > { %v608_v25 = vpop.permute.xlu0 %607  ;;  %v745_v27 = vpop.permute.xlu1 %744 }
 0x1d1   : > { %v613_v26 = vsel %vm480_vm2, %v608_v25, 0  ;;  %v750_v29 = vsel %vm480_vm2, %v745_v27, 0 }
 0x1d2   : > { %1321 = vmatpush3.bf16.xpose.msra.mxu1 %v613_v26 }
 0x1d3   : > { %1332 = vmatprep.subr.bf16.mxu1 %v1647_v0 }
 0x1d4   : > { %v605_v28 = vpop.permute.xlu0 %604  ;;  %v743_v31 = vpop.permute.xlu1 %742 }
 0x1d8   : > { %v881_v30 = vpop.permute.xlu0 %880  ;;  %v879_v33 = vpop.permute.xlu1 %878 }
 0x1d9   : > { %1323 = vmatmul.mubr.msk.bf16.vlgmr.msra.gmra.mrb[8].mxu1 %vm480_vm2, %v605_v28  ;;  %v886_v32 = vsel %vm480_vm2, %v881_v30, 0 }
 0x1da   : > { %1333 = vmatpush3.bf16.xpose.msra.mxu1 %v750_v29  ;;  %1334 = vmatprep.mubr.msk.bf16.mxu1 %vm1648_vm0, %v1647_v0 }
 0x1db   : > { %1344 = vmatprep.subr.bf16.mxu1 %v1647_v0 }
 0x1e1   : > { %1335 = vmatmul.mubr.msk.bf16.vlgmr.msra.gmra.mrb[12].mxu1 %vm480_vm2, %v743_v31 }
 0x1e2   : > { %1345 = vmatpush3.bf16.xpose.msra.mxu1 %v886_v32  ;;  %1346 = vmatprep.mubr.msk.bf16.mxu1 %vm1648_vm0, %v1647_v0 }
 0x1e3   : > { %1356 = vmatprep.subr.bf16.mxu1 %v1647_v0 }
 0x1e9   : > { %1347 = vmatmul.mubr.msk.bf16.vlgmr.msra.gmra.mrb[16].mxu1 %vm480_vm2, %v879_v33 }
 0x1ea   : > { %1360 = vmatprep.mubr.msk.bf16.mxu1 %vm1648_vm0, %v1647_v0 }
 0x23a   : > { %v521_v34 = vpop.f32.mrb[4].mxu1 }
 0x23b   : > { %v1312_v35 = vpop.f32.mrb[5].mxu1  ;;  %v528_v36 = vsel %vm480_vm2, %v521_v34, -inf }
 0x23c   : > { %529 = vmax.xlane.f32.xlu0 %v528_v36  ;;  %v524_v37 = vpop.f32.mrb[6].mxu1 }
 0x23d   : > { %v1313_v38 = vpop.f32.mrb[7].mxu1  ;;  %v531_v39 = vsel %vm480_vm2, %v524_v37, -inf }
 0x23e   : > { %532 = vmax.xlane.f32.xlu1 %v531_v39 }
 0x2ac   : > { %v649_v48 = vpop.f32.mrb[8].mxu1 }
 0x2ad   : > { %v1324_v49 = vpop.f32.mrb[9].mxu1  ;;  %v656_v50 = vsel %vm480_vm2, %v649_v48, -inf }
 0x2ae   : > { %657 = vmax.xlane.f32.xlu0 %v656_v50  ;;  %v652_v51 = vpop.f32.mrb[10].mxu1 }
 0x2af   : > { %v1325_v52 = vpop.f32.mrb[11].mxu1  ;;  %v659_v53 = vsel %vm480_vm2, %v652_v51, -inf }
 0x2b2   : > { %660 = vmax.xlane.f32.xlu0 %v659_v53 }
 0x2b4   : > { %v786_v54 = vpop.f32.mrb[12].mxu1 }
 0x2b5   : > { %v1336_v55 = vpop.f32.mrb[13].mxu1  ;;  %v793_v56 = vsel %vm480_vm2, %v786_v54, -inf }
 0x2b6   : > { %794 = vmax.xlane.f32.xlu1 %v793_v56  ;;  %v789_v57 = vpop.f32.mrb[14].mxu1 }
 0x2b7   : > { %v1337_v58 = vpop.f32.mrb[15].mxu1  ;;  %v796_v59 = vsel %vm480_vm2, %v789_v57, -inf }
 0x2b8   : > { %797 = vmax.xlane.f32.xlu0 %v796_v59 }
 0x2bc   : > { %v922_v60 = vpop.f32.mrb[16].mxu1 }
 0x2bd   : > { %v1348_v61 = vpop.f32.mrb[17].mxu1  ;;  %v929_v62 = vsel %vm480_vm2, %v922_v60, -inf }
 0x2be   : > { %930 = vmax.xlane.f32.xlu1 %v929_v62  ;;  %v925_v63 = vpop.f32.mrb[18].mxu1 }
 0x2bf   : > { %v1349_v1 = vpop.f32.mrb[19].mxu1  ;;  %v932_v2 = vsel %vm480_vm2, %v925_v63, -inf }
 0x2c0   : > { %933 = vmax.xlane.f32.xlu0 %v932_v2 }
 0x2c9   : > { %v530_v3 = vpop.xlane.xlu0 %529 }
 0x2ca   : > { %v534_v4 = vsub.f32 %v521_v34, %v530_v3 }
 0x2cb   : > { %v533_v5 = vpop.xlane.xlu1 %532 }
 0x2cc   : > { %v536_v6 = vmul.f32 1.442695, %v534_v4  ;;  %v535_v7 = vsub.f32 %v524_v37, %v533_v5 }
 0x2ce   : > { %1446 = vpow2.f32 %v536_v6  ;;  %v538_v8 = vmul.f32 1.442695, %v535_v7 }
 0x2d0   : > { %1448 = vpow2.f32 %v538_v8 }
 0x2d8   : > { %v1447_v9 = vpop.eup %1446 }
 0x2d9   : > { %v540_v10 = vsel %vm480_vm2, %v1447_v9, 0.0 }
 0x2da   : > { %v1449_v11 = vpop.eup %1448  ;;  %541 = vadd.xlane.f32.xlu1 %v540_v10 }
 0x2db   : > { %v543_v12 = vsel %vm480_vm2, %v1449_v11, 0.0 }
 0x2dc   : > { %544 = vadd.xlane.f32.xlu0 %v543_v12 }
 0x2eb   : > { %682 = vrot.lane.b32.xlu1 %v1935_v45, %s1650_s29 }
 0x33b   : > { %v658_v13 = vpop.xlane.xlu0 %657 }
 0x33c   : > { %v662_v14 = vsub.f32 %v649_v48, %v658_v13 }
 0x33e   : > { %v664_v15 = vmul.f32 1.442695, %v662_v14 }
 0x33f   : > { %v661_v16 = vpop.xlane.xlu0 %660 }
 0x340   : > { %1450 = vpow2.f32 %v664_v15  ;;  %v663_v17 = vsub.f32 %v652_v51, %v661_v16 }
 0x342   : > { %v666_v18 = vmul.f32 1.442695, %v663_v17 }
 0x343   : > { %v795_v19 = vpop.xlane.xlu1 %794 }
 0x344   : > { %1452 = vpow2.f32 %v666_v18  ;;  %v799_v20 = vsub.f32 %v786_v54, %v795_v19 }
 0x345   : > { %v798_v21 = vpop.xlane.xlu0 %797 }
 0x346   : > { %v801_v22 = vmul.f32 1.442695, %v799_v20  ;;  %v800_v23 = vsub.f32 %v789_v57, %v798_v21 }
 0x348   : > { %1454 = vpow2.f32 %v801_v22  ;;  %v803_v24 = vmul.f32 1.442695, %v800_v23  ;;  %v1444_v22 = vld [vmem:[#allocation8 + $0x30] sm:$0xff]  }
 0x349   : > { %1357 = vmatpush3.bf16.msra.mxu1 %v1444_v22 }
 0x34a   : > { %v1451_v25 = vpop.eup %1450  ;;  %1456 = vpow2.f32 %v803_v24  ;;  %v1445_v24 = vld [vmem:[#allocation8 + $0x38] sm:$0xff]   ;;  %1358 = vmatprep.subr.bf16.mxu1 %v1647_v0 }
 0x34b   : > { %v931_v26 = vpop.xlane.xlu1 %930  ;;  %v668_v27 = vsel %vm480_vm2, %v1451_v25, 0.0 }
 0x34c   : > { %v935_v28 = vsub.f32 %v922_v60, %v931_v26  ;;  %669 = vadd.xlane.f32.xlu1 %v668_v27 }
 0x34d   : > { %v934_v29 = vpop.xlane.xlu0 %933  ;;  %1359 = vmatpush3.bf16.msra.mxu1 %v1445_v24 }
 0x34e   : > { %v1453_v30 = vpop.eup %1452  ;;  %v937_v31 = vmul.f32 1.442695, %v935_v28  ;;  %v936_v32 = vsub.f32 %v925_v63, %v934_v29 }
 0x34f   : > { %v671_v33 = vsel %vm480_vm2, %v1453_v30, 0.0 }
 0x350   : > { %1458 = vpow2.f32 %v937_v31  ;;  %v939_v34 = vmul.f32 1.442695, %v936_v32  ;;  %672 = vadd.xlane.f32.xlu0 %v671_v33 }
 0x352   : > { %v1455_v35 = vpop.eup %1454  ;;  %1460 = vpow2.f32 %v939_v34 }
 0x353   : > { %v805_v36 = vsel %vm480_vm2, %v1455_v35, 0.0 }
 0x354   : > { %v1457_v37 = vpop.eup %1456  ;;  %806 = vadd.xlane.f32.xlu1 %v805_v36 }
 0x355   : > { %v808_v38 = vsel %vm480_vm2, %v1457_v37, 0.0 }
 0x356   : > { %809 = vadd.xlane.f32.xlu0 %v808_v38 }
 0x35a   : > { %v1459_v39 = vpop.eup %1458 }
 0x35b   : > { %v941_v40 = vsel %vm480_vm2, %v1459_v39, 0.0 }
 0x35c   : > { %v1461_v41 = vpop.eup %1460  ;;  %942 = vadd.xlane.f32.xlu1 %v941_v40  ;;  %v1245_v40 = vld [vmem:[%s2041_s3 + $0x3] ss:$0 sm:$0xff] }
 0x35d   : > { %v944_v42 = vsel %vm480_vm2, %v1461_v41, 0.0 }
 0x35e   : > { %945 = vadd.xlane.f32.xlu0 %v944_v42 }
 0x367   : > { %v542_v43 = vpop.xlane.xlu1 %541 }
 0x368   : > { %1462 = vrcp.f32 %v542_v43 }
 0x369   : > { %v545_v44 = vpop.xlane.xlu0 %544 }
 0x36a   : > { %1464 = vrcp.f32 %v545_v44 }
 0x36b   : > { %v683_v48 = vpop.permute.xlu1 %682 }
 0x36c   : > { %v688_v52 = vsel %vm556_vm3, %v683_v48, 0 }
 0x36d   : > { %954 = vrot.lane.b32.xlu1 %v1935_v45, %s1651_s8 }
 0x372   : > { %v1463_v46 = vpop.eup %1462 }
 0x373   : > { %v550_v49 = vmul.f32 %v1463_v46, %v1447_v9 }
 0x374   : > { %v1465_v47 = vpop.eup %1464  ;;  %818 = vrot.lane.b32.xlu0 %v1935_v45, %s1649_s26  ;;  %s1655_s26 = smov [#allocation9]  }
 0x375   : > { %v551_v50 = vmul.f32 %v1465_v47, %v1449_v11  ;;  %s1570_s29 = sshll.u32 %s1655_s26, 4  ;;  %s1571_s29 = int_to_ptr.vmem [resolvable:$false] %s1570_s29 }
 0x376   : > { %s1572_s8 = scalar_lea.vmem %s1571_s29, 512  ;;  %p1573_p9 = scmp.lt.s32.totalorder %s1986_s9, %s1571_s29 }
 0x377   : > { %v552_v51 = vpack.c.bf16 %v551_v50, %v550_v49  ;;  %p1574_p1 = scmp.lt.s32.totalorder %s1572_s8, %s1566_s13 }
 0x379   : > { %1317 = vmatmul.mubr.msk.bf16.vlgmr.msra.gmra.mrb[8].mxu0 %vm480_vm2, %v552_v51  ;;  %p1575_p5 = por %p1574_p1, %p1573_p9 }
 0x37a   : > { %1327 = vmatpush3.bf16.msra.mxu0 %v688_v52  ;;  %1328 = vmatprep.mubr.msk.bf16.mxu0 %vm1648_vm0, %v1647_v0 }
 0x37b   : > { %1338 = vmatprep.subr.bf16.mxu0 %v1647_v0  ;;  %p1576_p2 = pnand %p1575_p5, %p1569_p7 }
 0x3d9   : > { %v670_v53 = vpop.xlane.xlu1 %669 }
 0x3da   : > { %1466 = vrcp.f32 %v670_v53 }
 0x3dd   : > { %v673_v54 = vpop.xlane.xlu0 %672 }
 0x3de   : > { %1468 = vrcp.f32 %v673_v54 }
 0x3e1   : > { %v807_v55 = vpop.xlane.xlu1 %806 }
 0x3e2   : > { %1470 = vrcp.f32 %v807_v55 }
 0x3e3   : > { %v810_v45 = vpop.xlane.xlu0 %809 }
 0x3e4   : > { %1472 = vrcp.f32 %v810_v45  ;;  %v1467_v56 = vpop.eup %1466 }
 0x3e5   : > { %v678_v58 = vmul.f32 %v1467_v56, %v1451_v25 }
 0x3e8   : > { %v1469_v57 = vpop.eup %1468 }
 0x3e9   : > { %v679_v59 = vmul.f32 %v1469_v57, %v1453_v30  ;;  %v943_v60 = vpop.xlane.xlu1 %942 }
 0x3ea   : > { %1474 = vrcp.f32 %v943_v60 }
 0x3eb   : > { %v946_v61 = vpop.xlane.xlu0 %945  ;;  %v680_v62 = vpack.c.bf16 %v679_v59, %v678_v58 }
 0x3ec   : > { %1476 = vrcp.f32 %v946_v61  ;;  %v1471_v63 = vpop.eup %1470 }
 0x3ed   : > { %1329 = vmatmul.mubr.msk.bf16.vlgmr.msra.gmra.mrb[12].mxu0 %vm480_vm2, %v680_v62  ;;  %v815_v5 = vmul.f32 %v1471_v63, %v1455_v35  ;;  %v955_v6 = vpop.permute.xlu1 %954 }
 0x3ee   : > { %v1473_v1 = vpop.eup %1472  ;;  %1340 = vmatprep.mubr.msk.bf16.mxu0 %vm1648_vm0, %v1647_v0  ;;  %v960_v9 = vsel %vm556_vm3, %v955_v6, 0 }
 0x3ef   : > { %v816_v2 = vmul.f32 %v1473_v1, %v1457_v37  ;;  %v819_v3 = vpop.permute.xlu0 %818 }
 0x3f0   : > { %v824_v4 = vsel %vm556_vm3, %v819_v3, 0 }
 0x3f1   : > { %1339 = vmatpush3.bf16.msra.mxu0 %v824_v4  ;;  %v817_v7 = vpack.c.bf16 %v816_v2, %v815_v5 }
 0x3f2   : > { %1350 = vmatprep.subr.bf16.mxu0 %v1647_v0 }
 0x3f4   : > { %v1475_v8 = vpop.eup %1474 }
 0x3f5   : > { %1341 = vmatmul.mubr.msk.bf16.vlgmr.msra.gmra.mrb[16].mxu0 %vm480_vm2, %v817_v7  ;;  %v951_v12 = vmul.f32 %v1475_v8, %v1459_v39 }
 0x3f6   : > { %v1477_v10 = vpop.eup %1476  ;;  %1351 = vmatpush3.bf16.msra.mxu0 %v960_v9  ;;  %1352 = vmatprep.mubr.msk.bf16.mxu0 %vm1648_vm0, %v1647_v0 }
 0x3f7   : > { %v952_v11 = vmul.f32 %v1477_v10, %v1461_v41 }
 0x3f9   : > { %v953_v13 = vpack.c.bf16 %v952_v11, %v951_v12 }
 0x3fd   : > { %1353 = vmatmul.mubr.msk.bf16.vlgmr.msra.gmra.mrb[20].mxu0 %vm480_vm2, %v953_v13 }
 0x44c   : > { %v594_v14 = vpop.f32.mrb[8].mxu0 }
 0x44d   : > { %601 = vst.msk [vmem:[#allocation2] sm:$0xff] %vm480_vm2, %v594_v14  ;;  %v1318_v15 = vpop.f32.mrb[9].mxu0 }
 0x44e   : > { %v597_v16 = vpop.f32.mrb[10].mxu0 }
 0x44f   : > { %602 = vst.msk [vmem:[#allocation2 + $0x8] sm:$0xff] %vm480_vm2, %v597_v16  ;;  %v1319_v17 = vpop.f32.mrb[11].mxu0 }
 0x4c0   : > { %v724_v18 = vpop.f32.mrb[12].mxu0 }
 0x4c1   : > { %733 = vrot.lane.b32.xlu1 %v724_v18, %s1652_s14  ;;  %v1330_v19 = vpop.f32.mrb[13].mxu0 }
 0x4c2   : > { %v727_v20 = vpop.f32.mrb[14].mxu0 }
 0x4c3   : > { %735 = vrot.lane.b32.xlu0 %v727_v20, %s1652_s14  ;;  %v1331_v21 = vpop.f32.mrb[15].mxu0 }
 0x4c8   : > { %v860_v23 = vpop.f32.mrb[16].mxu0 }
 0x4c9   : > { %869 = vrot.lane.b32.xlu1 %v860_v23, %s1653_s6  ;;  %v1342_v25 = vpop.f32.mrb[17].mxu0 }
 0x4ca   : > { %v863_v26 = vpop.f32.mrb[18].mxu0 }
 0x4cb   : > { %871 = vrot.lane.b32.xlu0 %v863_v26, %s1653_s6  ;;  %v1343_v27 = vpop.f32.mrb[19].mxu0 }
 0x4d0   : > { %v996_v28 = vpop.f32.mrb[20].mxu0 }
 0x4d1   : > { %1005 = vrot.lane.b32.xlu1 %v996_v28, %s1654_s7  ;;  %v1354_v29 = vpop.f32.mrb[21].mxu0 }
 0x4d2   : > { %v999_v30 = vpop.f32.mrb[22].mxu0 }
 0x4d3   : > { %1007 = vrot.lane.b32.xlu0 %v999_v30, %s1654_s7  ;;  %v1355_v31 = vpop.f32.mrb[23].mxu0 }
 0x533   : > { %v734_v32 = vpop.permute.xlu1 %733 }
 0x534   : > { %740 = vst.msk [vmem:[#allocation2] sm:$0xff] %vm739_vm4, %v734_v32 }
 0x535   : > { %v736_v33 = vpop.permute.xlu0 %735 }
 0x536   : > { %741 = vst.msk [vmem:[#allocation2 + $0x8] sm:$0xff] %vm739_vm4, %v736_v33 }
 0x53b   : > { %v870_v34 = vpop.permute.xlu1 %869 }
 0x53c   : > { %876 = vst.msk [vmem:[#allocation2] sm:$0xff] %vm875_vm5, %v870_v34 }
 0x53d   : > { %v872_v0 = vpop.permute.xlu0 %871 }
 0x53e   : > { %877 = vst.msk [vmem:[#allocation2 + $0x8] sm:$0xff] %vm875_vm5, %v872_v0 }
 0x543   : > { %v1006_v35 = vpop.permute.xlu1 %1005 }
 0x544   : > { %1012 = vst.msk [vmem:[#allocation2] sm:$0xff] %vm1011_vm6, %v1006_v35 }
 0x545   : > { %v1008_v36 = vpop.permute.xlu0 %1007 }
 0x546   : > { %1013 = vst.msk [vmem:[#allocation2 + $0x8] sm:$0xff] %vm1011_vm6, %v1008_v36 }
 0x54b   : > { %v1014_v37 = vld [vmem:[#allocation2] sm:$0xff] }
 0x54d   : > { %v1015_v38 = vld [vmem:[#allocation2 + $0x8] sm:$0xff] }
 0x54e   : > { %v1016_v39 = vpack.c.bf16 %v1015_v38, %v1014_v37 }
 0x550   : > { %1361 = vmatmul.mubr.msk.bf16.vlgmr.msra.gmra.mrb[20].mxu1 %vm299_vm1, %v1016_v39 }
 0x623   : > { %v1079_v41 = vpop.f32.mrb[20].mxu1 }
 0x624   : > { %v1080_v42 = vadd.f32 %v1245_v40, %v1079_v41  ;;  %v1362_v43 = vpop.f32.mrb[21].mxu1 }
 0x625   : > { %v1082_v44 = vpop.f32.mrb[22].mxu1 }
 0x626   : > { %1086 = vst.msk [vmem:[%s266_s23] sm:$0xff] %vm299_vm1, %v1080_v42  ;;  %v1083_v46 = vadd.f32 %v1245_v40, %v1082_v44  ;;  %v1363_v47 = vpop.f32.mrb[23].mxu1 }
 0x628   : > { %1087 = vst.msk [vmem:[%s266_s23 + $0x8] sm:$0xff] %vm299_vm1, %v1083_v46 }
 0x629   : > { %1579 = shalt.err (!%p1576_p2)
}
 0x62a   : > { %s1580_s10 = scalar_lea.hbm %s1992_s12, 256  ;;  %s1584_s7 = scalar_lea.hbm %s2042_s4, 512 }
 0x62b   : > { %p1581_p6 = scmp.ne.s32.totalorder %s1992_s12, %s1580_s10  ;;  %p1585_p0 = scmp.lt.u32.totalorder %s1992_s12, %s2042_s4 }
 0x62c   : > { %p1586_p12 = scmp.lt.u32.totalorder %s1584_s7, %s1580_s10  ;;  %p1588_p10 = scmp.lt.u32.totalorder %s1580_s10, %s1992_s12 }
 0x62d   : > { %p1582_p8 = pnand %p1581_p6, %p2062_p13 }
 0x62e   : > { %p1587_p11 = por %p1586_p12, %p1585_p0 }
 0x62f   : > { %p1583_p4 = pneg %p1582_p8 }
 0x630   : > { %p1589_p3 = por %p1588_p10, %p1587_p11 }
 0x632   : > { %p1590_p7 = pnand %p1589_p3, %p1583_p4 }
 0x634   : > { %1593 = shalt.err (!%p1590_p7)
}
 0x635   : > { %s1656_s0 = smov 128  }
 0x636   : > { %1372 = dma.vmem_to_hbm [thread:$0]  (%p2062_p13), %s1986_s9, 256, %s1992_s12, %s1089_s19, %s1656_s0, %s1656_s0, %s1652_s14  }
 0x637 PF: > { %s1117_s23 = sand.u32 1, %s1628_s15   ;;  %p2063_p9 = scmp.ne.s32.totalorder %s2050_s22, 0 }
 0x638   : > { %p2064_p1 = scmp.ge.s32.totalorder %s1640_s18, 2  ;;  %s1118_s20 = scalar_lea.sflag [#allocation5], %s1117_s23 }
 0x63a   : > { %p1386_p5 = pnand %p2064_p1, %p2063_p9 }
 0x63c   : > { %1623 = dma.done.wait (!%p1386_p5), %s1118_s20, 256  }
 0x63d   : > { %1625 = vsyncadd (!%p1386_p5), %s1118_s20, 4294967040  ;;  %p20_p2 = scmp.ge.s32.totalorder %s1738_s27, 4   ;;  %s2065_s15 = smov %s1632_s16 }
 0x63e   : > { %s2066_s16 = smov %s1636_s17  ;;  %s2067_s17 = smov %s1772_s24 }
 0x63f   : > { %s2068_s18 = smov %s1738_s27  ;;  %22 = sbr.rel (!%p20_p2) target bundleno = 10 (0xa), region = 104 }
 0x646   :  { %1123 = vsyncpa [#allocation4], 1 }
 0x647   :  { %1125 = vsyncpa [#allocation4 + $0x1], 1 }
 0x648   :  { %1126 = vsyncpa [#allocation7], 1 }
 0x649   :  { %1128 = vsyncpa [#allocation7 + $0x1], 1 }
 0x64a   :  { %1129 = vsyncpa [#allocation5], 1 }
 0x64b   :  { %1131 = vsyncpa [#allocation5 + $0x1], 1 }

</bundles_post_ra>
